<compile_context>
chip_gen: v7x
topology: tpu7x:2x2x1
jax: 0.10.0
libtpu: 0.0.40
codegen_flags: <defaults>
</compile_context>

<pallas_src>
import functools

import jax
import jax.numpy as jnp
from jax.experimental import pallas as pl
from jax.experimental.pallas import tpu as pltpu

_LANES = 128
_MIB = 1024 * 1024
_PE_RESIDENT_MAX_BYTES = 4 * _MIB       # sliced PE below this -> whole copy resident in VMEM
_DEFAULT_MIN_PALLAS_BYTES = 1 * _MIB    # below this, a fused XLA add beats a kernel launch


def build_positional_encoding(d_model: int, max_len: int = 100) -> jnp.ndarray:
    """Deterministic PE table, identical math to the PyTorch __init__ (even d_model)."""
    assert d_model % 2 == 0, "even d_model assumed (matches the reference module usage)"
    position = jnp.arange(0, max_len, dtype=jnp.float32)[:, None]            # (max_len, 1)
    div_term = jnp.exp(
        jnp.arange(0, d_model, 2, dtype=jnp.float32)
        * (-jnp.log(jnp.float32(10000.0)) / d_model)
    )                                                                        # (d_model//2,)
    angles = position * div_term                                             # (max_len, d_model//2)
    pe = jnp.stack([jnp.sin(angles), jnp.cos(angles)], axis=-1)              # sin even / cos odd
    return pe.reshape(max_len, d_model)                                      # (max_len, d_model)


# ---------------------------------------------------------------------------
# Hardware-generation parametrization (bandwidth / #TCs / VMEM budget).
# ---------------------------------------------------------------------------
def _tpu_generation() -> str:
    try:
        kind = jax.devices()[0].device_kind.lower()
    except Exception:
        return "unknown"
    if "v7" in kind or "7x" in kind:
        return "v7x"
    if "v6" in kind:
        return "v6e"
    if "v5" in kind:
        return "v5e"
    return "unknown"


def _gen_params(gen: str):
    """Returns (target x-tile bytes, #parallel TensorCores, VMEM limit cap)."""
    if gen == "v7x":
        return 8 * _MIB, 2, 48 * _MIB    # 64 MiB physical VMEM; leave headroom
    if gen == "v6e":
        return 4 * _MIB, 1, 96 * _MIB    # 128 MiB physical
    return 2 * _MIB, 1, 96 * _MIB        # v5e / unknown: 2 MiB is already past the knee


def _sublane(itemsize: int) -> int:
    return {4: 8, 2: 16, 1: 32}.get(itemsize, 8)


def _choose_row_tile(rows: int, lanes: int, itemsize: int, target_bytes: int) -> int:
    sub = _sublane(itemsize)
    t = (target_bytes // (lanes * itemsize)) // sub * sub
    t = max(sub, t)
    # Either a multiple of the sublane granularity or the full extent.
    return min(t, rows)


# ---------------------------------------------------------------------------
# Kernels.
# ---------------------------------------------------------------------------
def _pe_add_tiled_kernel(x_ref, pe_ref, o_ref):
    # Both operands are (row_tile, 128) tiles, same dtype -> pure per-vreg VPU add.
    o_ref[...] = x_ref[...] + pe_ref[...]


def _pe_add_resident_kernel(row_tile, full_rows, x_ref, pe_ref, o_ref):
    # pe_ref holds the whole (R, 128) table in VMEM; slice the current row tile.
    if row_tile == full_rows:
        pe_tile = pe_ref[...]
    else:
        # row_tile < R  =>  row_tile is a multiple of the sublane granularity (>= 8).
        start = pl.multiple_of(pl.program_id(0) * row_tile, 8)
        pe_tile = pe_ref[pl.ds(start, row_tile), :]
    o_ref[...] = x_ref[...] + pe_tile


# ---------------------------------------------------------------------------
# Tiled broadcast add:  x3 (B, R, 128) + pe2 (R, 128)[None].
# ---------------------------------------------------------------------------
def _tiled_pe_add(x3: jnp.ndarray, pe2: jnp.ndarray) -> jnp.ndarray:
    B, R, L = x3.shape
    itemsize = jnp.dtype(x3.dtype).itemsize
    gen = _tpu_generation()
    target_tile_bytes, num_cores, vmem_cap = _gen_params(gen)
    sub = _sublane(itemsize)

    row_tile = _choose_row_tile(R, L, itemsize, target_tile_bytes)
    n_row_tiles = pl.cdiv(R, row_tile)

    # Megacore (v7x): guarantee >= 2 parallel grid steps so both TCs get work.
    if num_cores >= 2 and n_row_tiles * B < 2:
        half = (row_tile // 2) // sub * sub
        if half >= sub:
            row_tile = half
            n_row_tiles = pl.cdiv(R, row_tile)

    pe_bytes = R * L * itemsize
    pe_resident = (pe_bytes <= _PE_RESIDENT_MAX_BYTES) and (R % row_tile == 0)

    if not pe_resident:
        # PE is streamed per row tile (6 double-buffered streams): cap the tile
        # so the pipeline still fits comfortably (matters only for v7x's 8 MiB target).
        capped = min(target_tile_bytes, 4 * _MIB)
        if capped < target_tile_bytes:
            row_tile = _choose_row_tile(R, L, itemsize, capped)
            n_row_tiles = pl.cdiv(R, row_tile)

    tile_bytes = row_tile * L * itemsize
    if pe_resident:
        vmem_need = 4 * tile_bytes + 2 * pe_bytes + 8 * _MIB   # x + out double-buffered, PE resident
    else:
        vmem_need = 6 * tile_bytes + 8 * _MIB                   # x + pe + out, all double-buffered
    vmem_limit = int(min(vmem_cap, max(32 * _MIB, vmem_need)))

    xo_spec = pl.BlockSpec((pl.Squeezed(), row_tile, L), lambda i, b: (b, i, 0))
    if pe_resident:
        pe_spec = pl.BlockSpec((R, L), lambda i, b: (0, 0))          # whole table, DMA'd once
        kernel = functools.partial(_pe_add_resident_kernel, row_tile, R)
    else:
        pe_spec = pl.BlockSpec((row_tile, L), lambda i, b: (i, 0))   # loop-invariant across batch
        kernel = _pe_add_tiled_kernel

    return pl.pallas_call(
        kernel,
        out_shape=jax.ShapeDtypeStruct((B, R, L), x3.dtype),
        grid_spec=pltpu.PrefetchScalarGridSpec(
            num_scalar_prefetch=0,
            # Batch innermost: the PE block index is constant across the inner
            # loop, so PE is never re-DMA'd per batch step.
            grid=(n_row_tiles, B),
            in_specs=[xo_spec, pe_spec],
            out_specs=pl.BlockSpec((pl.Squeezed(), row_tile, L), lambda i, b: (b, i, 0)),
        ),
        compiler_params=pltpu.CompilerParams(
            dimension_semantics=("parallel", "parallel"),
            vmem_limit_bytes=vmem_limit,
        ),
    )(x3, pe2)


# ---------------------------------------------------------------------------
# Public forward.
# ---------------------------------------------------------------------------
def positional_encoding_forward(
    x: jnp.ndarray,
    pe_full: jnp.ndarray,
    *,
    min_pallas_bytes: int = _DEFAULT_MIN_PALLAS_BYTES,
) -> jnp.ndarray:
    """x: (B, S, D); pe_full: (max_len, D). Returns x + pe_full[None, :S, :]."""
    B, S, D = x.shape
    max_len, d_model = pe_full.shape
    if D != d_model:
        raise ValueError(f"d_model mismatch: x has {D}, pe table has {d_model}")
    if S > max_len:
        raise ValueError(f"sequence length {S} exceeds max_len {max_len}")

    pe = pe_full[:S, :].astype(x.dtype)  # slice + cast once in the wrapper (glue)

    itemsize = jnp.dtype(x.dtype).itemsize
    if B * S * D * itemsize < min_pallas_bytes:
        # Tiny input: kernel-launch + per-step overhead dominates; fused XLA add wins.
        return x + pe[None, :, :]

    # Lane-dense layout: flatten each (S, D) payload into rows of 128 lanes so
    # every store is an unmasked full-width vst. If S*D isn't a multiple of 128,
    # zero-pad the flattened payload (XLA glue, usually pad == 0).
    flat = S * D
    R = pl.cdiv(flat, _LANES)
    pad = R * _LANES - flat
    x_flat = x.reshape(B, flat)
    pe_flat = pe.reshape(flat)
    if pad:
        x_flat = jnp.pad(x_flat, ((0, 0), (0, pad)))
        pe_flat = jnp.pad(pe_flat, ((0, pad),))

    out = _tiled_pe_add(x_flat.reshape(B, R, _LANES), pe_flat.reshape(R, _LANES))
    out = out.reshape(B, R * _LANES)
    if pad:
        out = out[:, :flat]
    return out.reshape(B, S, D)


if __name__ == "__main__":
    key = jax.random.PRNGKey(0)
    max_len = 100

    # Small shapes consistent with the module: batch=2, seq=8, d_model=32.
    B, S, D = 2, 8, 32
    pe_full = build_positional_encoding(D, max_len=max_len)
    x = jax.random.normal(key, (B, S, D), dtype=jnp.float32)

    # Force the Pallas path (the input is far below the tiny-input threshold).
    out = jax.block_until_ready(positional_encoding_forward(x, pe_full, min_pallas_bytes=0))
    ref = x + pe_full[None, :S, :]
    assert out.shape == (B, S, D)
    assert jnp.allclose(out, ref, atol=1e-6, rtol=1e-6)

    # Non-lane-dense shape (S*D % 128 != 0) -> padded lane-dense path.
    B2, S2, D2 = 2, 10, 48
    pe_full2 = build_positional_encoding(D2, max_len=max_len)
    x2 = jax.random.normal(jax.random.PRNGKey(0), (B2, S2, D2), dtype=jnp.float32)
    out2 = jax.block_until_ready(positional_encoding_forward(x2, pe_full2, min_pallas_bytes=0))
    ref2 = x2 + pe_full2[None, :S2, :]
    assert jnp.allclose(out2, ref2, atol=1e-6, rtol=1e-6)

    # Tiny-input XLA short-circuit (default threshold) gives identical results.
    out3 = jax.block_until_ready(positional_encoding_forward(x, pe_full))
    assert jnp.allclose(out3, ref, atol=1e-6, rtol=1e-6)

    print("KERNEL_OK")
</pallas_src>

<mosaic_0001>
module attributes {stable_mosaic.version = 11 : i64} {
  func.func @_pe_add_resident_kernel(%arg0: i32, %arg1: i32, %arg2: memref<1x2x128xf32, #tpu.memory_space<vmem>>, %arg3: memref<2x128xf32, #tpu.memory_space<vmem>>, %arg4: memref<1x2x128xf32, #tpu.memory_space<vmem>>) attributes {dimension_semantics = [#tpu.dimension_semantics<parallel>, #tpu.dimension_semantics<parallel>], iteration_bounds = array<i64: 1, 2>, scalar_prefetch = 0 : i64, scratch_operands = 0 : i64, tpu.core_type = #tpu.core_type<tc>, window_params = [{transform_indices = @transform_0, window_bounds = array<i64: 1, 2, 128>}, {pipeline_mode = #tpu.pipeline_mode<synchronous>, transform_indices = @transform_1, window_bounds = array<i64: 2, 128>}, {transform_indices = @transform_2, window_bounds = array<i64: 1, 2, 128>}]} {
    %c0 = arith.constant 0 : index
    %c0_0 = arith.constant 0 : index
    %0 = vector.load %arg3[%c0, %c0_0] : memref<2x128xf32, #tpu.memory_space<vmem>>, vector<2x128xf32>
    %c0_1 = arith.constant 0 : index
    %c0_2 = arith.constant 0 : index
    %c0_3 = arith.constant 0 : index
    %1 = vector.load %arg2[%c0_1, %c0_2, %c0_3] : memref<1x2x128xf32, #tpu.memory_space<vmem>>, vector<1x2x128xf32>
    %2 = vector.shape_cast %1 : vector<1x2x128xf32> to vector<2x128xf32>
    %3 = arith.addf %2, %0 : vector<2x128xf32>
    %c0_4 = arith.constant 0 : index
    %c0_5 = arith.constant 0 : index
    %c0_6 = arith.constant 0 : index
    %4 = vector.load %arg4[%c0_4, %c0_5, %c0_6] : memref<1x2x128xf32, #tpu.memory_space<vmem>>, vector<1x2x128xf32>
    %5 = vector.shape_cast %4 : vector<1x2x128xf32> to vector<2x128xf32>
    %6 = vector.shape_cast %3 : vector<2x128xf32> to vector<1x2x128xf32>
    tpu.vector_store %arg4[%c0_4, %c0_5, %c0_6], %6 {strides = array<i32>} : memref<1x2x128xf32, #tpu.memory_space<vmem>>, vector<1x2x128xf32>,
    return
  }
  func.func @transform_0(%arg0: i32, %arg1: i32) -> (i32, i32, i32) {
    %c0_i32 = arith.constant 0 : i32
    %c0_i32_0 = arith.constant 0 : i32
    return %arg1, %arg0, %c0_i32 : i32, i32, i32
  }
  func.func @transform_1(%arg0: i32, %arg1: i32) -> (i32, i32) {
    %c0_i32 = arith.constant 0 : i32
    %c0_i32_0 = arith.constant 0 : i32
    %c0_i32_1 = arith.constant 0 : i32
    return %c0_i32, %c0_i32_0 : i32, i32
  }
  func.func @transform_2(%arg0: i32, %arg1: i32) -> (i32, i32, i32) {
    %c0_i32 = arith.constant 0 : i32
    %c0_i32_0 = arith.constant 0 : i32
    return %arg1, %arg0, %c0_i32 : i32, i32, i32
  }
}

</mosaic_0001>

<bundles_post_ra>
// kernel: tpu_custom_call.1
= control target key start
LH: loop header
LB: loop body
LE: loop exit
PB: predicated region body
PF: predicated region fallthrough
CT: control target
= control target key end

     0   :  { %7 = vsyncpa [#allocation3], 0  ;;  %s656_s0 = inlined_call_operand.hbm [shape: f32[2,2,128], index: 0, kind: input, shape index: {}]   ;;  %s657_s1 = inlined_call_operand.vmem [shape: f32[2,128], index: 1, kind: input, shape index: {}]   ;;  %s658_s2 = inlined_call_operand.hbm [shape: f32[2,2,128], index: 2, kind: output, shape index: {}]  }
   0x1   :  { %9 = vsyncpa [#allocation3 + $0x1], 0 }
   0x2   :  { %10 = vsyncpa [#allocation4], 0 }
   0x3   :  { %12 = vsyncpa [#allocation4 + $0x1], 0  ;;  %s481_s9 = smov 0   ;;  %s483_s10 = smov 0  }
   0x4   :  { %s485_s11 = smov 0   ;;  %s487_s12 = smov 0  }
   0x5   :  { %s489_s13 = smov 0   ;;  %s491_s14 = smov 0  }
   0x6 LB: > { %s275_s15 = sadd.s32 4294967295, %s462_s14   ;;  %s276_s16 = sadd.s32 4294967294, %s462_s14   ;;  %s462_s14 = sphi %s491_s14, %s18_s14   ;;  %s458_s13 = sphi %s489_s13, %s674_s13   ;;  %s454_s12 = sphi %s487_s12, %s673_s12   ;;  %s450_s11 = sphi %s485_s11, %s672_s11   ;;  %s446_s10 = sphi %s483_s10, %s671_s10   ;;  %s442_s9 = sphi %s481_s9, %s670_s9  }
   0x7   : > { %s27_s17 = sadd.s32 1, %s458_s13  ;;  %s39_s18 = sadd.s32 1, %s450_s11 }
   0x8   : > { %p28_p0 = scmp.ge.s32.totalorder %s27_s17, 2  ;;  %p46_p1 = scmp.ne.s32.totalorder %s450_s11, %s446_s10 }
   0x9   : > { %p47_p2 = scmp.eq.s32.totalorder %s462_s14, 0  ;;  %p52_p3 = scmp.ne.s32.totalorder %s446_s10, %s442_s9 }
   0xa   : > { %s676_s17 = smov (%p28_p0, %s27_s17), 0  ;;  %p53_p5 = scmp.eq.s32.totalorder %s275_s15, 0 }
   0xb   : > { %p522_p4 = por %p47_p2, %p46_p1  ;;  %s34_s20 = ssub.s32 %s458_s13, %s676_s17 }
   0xc   : > { %p99_p6 = scmp.eq.s32.totalorder %s275_s15, 1  ;;  %p37_p7 = scmp.eq.s32.totalorder %s34_s20, 0 }
   0xd   : > { %p528_p8 = por %p53_p5, %p52_p3  ;;  %p105_p10 = scmp.eq.s32.totalorder %s276_s16, 1 }
   0xe   : > { %p532_p9 = por %p99_p6, %p46_p1  ;;  %p300_p13 = scmp.lt.s32.totalorder %s462_s14, 2 }
   0xf   : > { %s537_s23 = scalar_select %p37_p7, %s450_s11, %s39_s18  }
  0x10   : > { %s662_s22 = scalar_select %p532_p9, 1, 0 }
  0x11   : > { %p539_p11 = por %p105_p10, %p52_p3  ;;  %s128_s25 = sand.u32 1, %s450_s11  }
  0x12   : > { %s279_s26 = sshll.u32 %s128_s25, 1  ;;  %s280_s27 = sshll.u32 %s458_s13, 5 }
  0x13   : > { %s663_s24 = scalar_select %p539_p11, 1, 0 }
  0x14   : > { %s550_s30 = scalar_lea.hbm %s656_s0, %s280_s27  ;;  %s132_s3 = scalar_lea.vmem [#allocation2], %s279_s26 }
  0x15   : > { %s140_s4 = sshll.u32 %s132_s3, 4  ;;  %p556_p0 = pnand %p300_p13, %p522_p4  ;;  %s552_s4 = int_to_ptr.vmem [resolvable:$true] %s140_s4 }
  0x16   : > { %s129_s6 = scalar_lea.sflag [#allocation3], %s128_s25  ;;  %s350_s7 = scalar_lea.hbm %s550_s30, 32 }
  0x17   : > { %p351_p3 = scmp.ne.s32.totalorder %s550_s30, %s350_s7  ;;  %p352_p5 = pneg %p556_p0 }
  0x18   : > { %s355_s16 = scalar_lea.hbm %s656_s0, 64  ;;  %p356_p4 = scmp.lt.u32.totalorder %s550_s30, %s656_s0 }
  0x19   : > { %p353_p6 = pnand %p352_p5, %p351_p3  ;;  %p357_p10 = scmp.lt.u32.totalorder %s355_s16, %s350_s7 }
  0x1a   : > { %p359_p12 = scmp.lt.u32.totalorder %s350_s7, %s550_s30 }
  0x1b   : > { %p354_p7 = pneg %p353_p6  ;;  %p358_p13 = por %p357_p10, %p356_p4 }
  0x1d   : > { %p360_p1 = por %p359_p12, %p358_p13 }
  0x1f   : > { %p361_p2 = pnand %p360_p1, %p354_p7 }
  0x21   : > { %364 = shalt.err (!%p361_p2)
}
  0x22   : > { %s365_s20 = scalar_lea.vmem %s552_s4, 32  ;;  %s464_s25 = smov [#allocation2]  }
  0x23   : > { %p366_p3 = scmp.ne.s32.totalorder %s552_s4, %s365_s20  ;;  %s370_s26 = sshll.u32 %s464_s25, 4  ;;  %s371_s26 = int_to_ptr.vmem [resolvable:$false] %s370_s26 }
  0x24   : > { %s372_s27 = scalar_lea.vmem %s371_s26, 64  ;;  %p373_p9 = scmp.lt.s32.totalorder %s552_s4, %s371_s26 }
  0x25   : > { %p368_p6 = pnand %p366_p3, %p352_p5  ;;  %p374_p4 = scmp.lt.s32.totalorder %s372_s27, %s365_s20 }
  0x27   : > { %p369_p11 = pneg %p368_p6  ;;  %p375_p10 = por %p374_p4, %p373_p9 }
  0x29   : > { %p376_p12 = pnand %p375_p10, %p369_p11 }
  0x2b   : > { %379 = shalt.err (!%p376_p12)
}
  0x2c   : > { %295 = dma.hbm_to_vmem [thread:$0]  (!%p556_p0), %s550_s30, 32, %s552_s4, %s129_s6  }
  0x2d   : > { %p665_p1 = scmp.lt.s32.totalorder %s462_s14, 3  ;;  %p666_p2 = scmp.ge.s32.totalorder %s462_s14, 1 }
  0x2f   : > { %p146_p5 = pnand %p666_p2, %p665_p1 }
  0x30   : > { %s592_s28 = sand.u32 (!%p146_p5), 1, %s446_s10  }
  0x31   : > { %149 = sbr.rel (%p146_p5) target bundleno = 83 (0x53), region = 28  ;;  %s282_s29 = sshll.u32 (!%p146_p5), %s592_s28, 1 }
  0x32   : > { %s152_s3 = scalar_lea.sflag (!%p146_p5), [#allocation3], %s592_s28  ;;  %s155_s7 = scalar_lea.vmem (!%p146_p5), [#allocation2], %s282_s29 }
  0x38   : > { %433 = dma.done.wait (%p528_p8), %s152_s3, 32  }
  0x39   : > { %435 = vsyncadd (%p528_p8), %s152_s3, 4294967264  ;;  %s175_s30 = scalar_lea.vmem [#allocation5], %s282_s29  ;;  %s285_s5 = sshll.u32 %s454_s12, 5  ;;  %v176_v0 = vld [vmem:[%s657_s1] sm:$0x3] }
  0x3a   : > { %s195_s4 = sshll.u32 %s175_s30, 4  ;;  %v177_v1 = vld [vmem:[%s155_s7] sm:$0x3]  ;;  %s609_s21 = scalar_lea.hbm %s658_s2, %s285_s5  ;;  %s604_s4 = int_to_ptr.vmem [resolvable:$true] %s195_s4 }
  0x3b   : > { %v178_v2 = vadd.f32 %v177_v1, %v176_v0  ;;  %s181_s18 = scalar_lea.sflag [#allocation4], %s592_s28  ;;  %s380_s19 = scalar_lea.vmem %s604_s4, 32 }
  0x3c   : > { %p381_p8 = scmp.ne.s32.totalorder %s604_s4, %s380_s19  ;;  %p667_p9 = scmp.ne.s32.totalorder %s662_s22, 0 }
  0x3d   : > { %179 = vst [vmem:[%s175_s30] sm:$0x3] %v178_v2  ;;  %s465_s12 = smov [#allocation5]  }
  0x3e   : > { %p382_p11 = pnand %p381_p8, %p667_p9  ;;  %s384_s20 = sshll.u32 %s465_s12, 4  ;;  %s385_s20 = int_to_ptr.vmem [resolvable:$false] %s384_s20 }
  0x3f   : > { %s386_s25 = scalar_lea.vmem %s385_s20, 64  ;;  %p387_p7 = scmp.lt.s32.totalorder %s604_s4, %s385_s20 }
  0x40   : > { %p383_p0 = pneg %p382_p11  ;;  %p388_p13 = scmp.lt.s32.totalorder %s386_s25, %s380_s19 }
  0x42   : > { %p389_p3 = por %p388_p13, %p387_p7 }
  0x44   : > { %p390_p6 = pnand %p389_p3, %p383_p0 }
  0x46   : > { %393 = shalt.err (!%p390_p6)
}
  0x47   : > { %s394_s26 = scalar_lea.hbm %s609_s21, 32  ;;  %s398_s29 = scalar_lea.hbm %s658_s2, 64 }
  0x48   : > { %p395_p4 = scmp.ne.s32.totalorder %s609_s21, %s394_s26  ;;  %p399_p1 = scmp.lt.u32.totalorder %s609_s21, %s658_s2 }
  0x49   : > { %p400_p2 = scmp.lt.u32.totalorder %s398_s29, %s394_s26  ;;  %p402_p8 = scmp.lt.u32.totalorder %s394_s26, %s609_s21 }
  0x4a   : > { %p396_p10 = pnand %p395_p4, %p667_p9 }
  0x4b   : > { %p401_p5 = por %p400_p2, %p399_p1 }
  0x4c   : > { %p397_p12 = pneg %p396_p10 }
  0x4d   : > { %p403_p11 = por %p402_p8, %p401_p5 }
  0x4f   : > { %p404_p0 = pnand %p403_p11, %p397_p12 }
  0x51   : > { %407 = shalt.err (!%p404_p0)
}
  0x52   : > { %290 = dma.vmem_to_hbm [thread:$0]  (%p667_p9), %s604_s4, 32, %s609_s21, %s181_s18  }
  0x53 PF: > { %s207_s30 = sand.u32 1, %s442_s9   ;;  %p668_p7 = scmp.ne.s32.totalorder %s663_s24, 0 }
  0x54   : > { %p669_p13 = scmp.ge.s32.totalorder %s462_s14, 2  ;;  %s208_s5 = scalar_lea.sflag [#allocation4], %s207_s30 }
  0x56   : > { %p297_p3 = pnand %p669_p13, %p668_p7 }
  0x58   : > { %437 = dma.done.wait (!%p297_p3), %s208_s5, 32  }
  0x59   : > { %439 = vsyncadd (!%p297_p3), %s208_s5, 4294967264  ;;  %s18_s14 = sadd.s32 1, %s462_s14   ;;  %s670_s9 = smov %s446_s10 }
  0x5a   : > { %p15_p6 = scmp.ge.s32.totalorder %s18_s14, 4   ;;  %s671_s10 = smov %s450_s11 }
  0x5b   : > { %s672_s11 = smov %s537_s23  ;;  %s673_s12 = smov %s458_s13 }
  0x5c   : > { %s674_s13 = smov %s676_s17  ;;  %17 = sbr.rel (!%p15_p6) target bundleno = 6 (0x6), region = 73 }
  0x63   :  { %213 = vsyncpa [#allocation3], 1 }
  0x64   :  { %215 = vsyncpa [#allocation3 + $0x1], 1 }
  0x65   :  { %216 = vsyncpa [#allocation4], 1 }
  0x66   :  { %218 = vsyncpa [#allocation4 + $0x1], 1 }

</bundles_post_ra>
